<compile_context>
chip_gen: v6e
topology: v6e:2x2x1
jax: 0.10.0
libtpu: 0.0.40
codegen_flags: <defaults>
</compile_context>

<pallas_src>
import functools

import jax
import jax.numpy as jnp
from jax import lax
from jax.experimental import pallas as pl
from jax.experimental.pallas import tpu as pltpu

EMBED_DIM = 16          # embed_dim == encoder_dim (required by the reference's residual adds)
N_HEADS = 4
MLP_RATIO = 4
LN_EPS = 1e-5

# ---- constant-slab row layout (all offsets are multiples of 8 = sublane tile) ----
_OFF_VEC = 0            # 9 rows : ln1g, ln1b, ln2g, ln2b, ln3g, ln3b, bv, b1, b2
_OFF_WV = 16            # 16 rows: folded cross-attn value path (E, E), lanes [:E]
_OFF_W1 = 32            # 16 rows: MLP first linear (E, 4E), full width
_OFF_W2 = 48            # 64 rows: MLP second linear (4E, E), lanes [:E]
_SLAB_ROWS = 112        # padded to a multiple of 8
_SLAB_COLS = MLP_RATIO * EMBED_DIM   # 64


# ---------------------------------------------------------------- helpers ----
def _layernorm(x, gamma, beta):
    mu = jnp.mean(x, axis=-1, keepdims=True)
    var = jnp.mean((x - mu) ** 2, axis=-1, keepdims=True)   # biased var (PyTorch LayerNorm)
    return (x - mu) * lax.rsqrt(var + LN_EPS) * gamma + beta


def _gelu_exact(x):
    # PyTorch nn.GELU() default = exact (erf) GELU
    return 0.5 * x * (1.0 + lax.erf(x * 0.7071067811865476))


# ----------------------------------------------------------------- kernel ----
def decoder_block_kernel(x_ref, enc_ref, c_ref, out_ref, *, b, n):
    """Single grid step over the whole flattened batch.

    x_ref   : (b*n, E)       decoder tokens, batch/seq flattened
    enc_ref : (b_pad, E)     encoder embedding, one row per batch (zero-padded rows)
    c_ref   : (112, 4E)      packed constants (see _OFF_* layout above)
    out_ref : (b*n, E)
    """
    E = EMBED_DIM

    x = x_ref[...].astype(jnp.float32)          # (b*n, E)
    enc = enc_ref[...].astype(jnp.float32)      # (b_pad, E)

    vec = c_ref[_OFF_VEC:_OFF_VEC + 9, :]       # (9, 4E)
    ln1g, ln1b = vec[0:1, :E], vec[1:2, :E]
    ln2g, ln2b = vec[2:3, :E], vec[3:4, :E]
    ln3g, ln3b = vec[4:5, :E], vec[5:6, :E]
    b_v = vec[6:7, :E]
    b1 = vec[7:8, :]                            # full 4E row
    b2 = vec[8:9, :E]

    wv = c_ref[_OFF_WV:_OFF_WV + E, :E]                    # (E, E)   folded V-path
    w1 = c_ref[_OFF_W1:_OFF_W1 + E, :]                     # (E, 4E)
    w2 = c_ref[_OFF_W2:_OFF_W2 + MLP_RATIO * E, :E]        # (4E, E)

    # Residual 1: self-attention output is dead in the reference -> x + x = 2x.
    h1 = _layernorm(2.0 * x, ln1g, ln1b)

    # Cross-attention closed form, computed on b rows only (one row per batch),
    # then broadcast across each batch's n tokens inside VMEM (sublane broadcast).
    ca_rows = jnp.dot(enc, wv, preferred_element_type=jnp.float32) + b_v   # (b_pad, E)
    h1_ca = jnp.concatenate(
        [h1[i * n:(i + 1) * n, :] + ca_rows[i:i + 1, :] for i in range(b)], axis=0)
    h2 = _layernorm(h1_ca, ln2g, ln2b)

    # MLP: Linear -> GELU -> Linear -> GELU
    m = _gelu_exact(jnp.dot(h2, w1, preferred_element_type=jnp.float32) + b1)
    m = _gelu_exact(jnp.dot(m, w2, preferred_element_type=jnp.float32) + b2)

    out_ref[...] = _layernorm(h2 + m, ln3g, ln3b).astype(out_ref.dtype)


# ------------------------------------------------------------- host prep ----
def prepare_params(params):
    """One-time fold + pack of all kernel constants into a single (112, 4E) slab.
    Call this once (outside the per-call path); the result is a plain array operand."""
    E = EMBED_DIM
    W = MLP_RATIO * E

    wv = params["w_kv"][:, E:] @ params["w_proj_ca"]          # (E, E)   folded V-path
    bv = params["b_kv"][:, E:] @ params["w_proj_ca"]          # (1, E)   folded V-path bias

    def pad_row(v):
        return jnp.pad(v, ((0, 0), (0, W - v.shape[1])))

    vec = jnp.concatenate([
        pad_row(params["ln1g"]), pad_row(params["ln1b"]),
        pad_row(params["ln2g"]), pad_row(params["ln2b"]),
        pad_row(params["ln3g"]), pad_row(params["ln3b"]),
        pad_row(bv), params["b1"], pad_row(params["b2"]),
    ], axis=0)                                                # (9, 4E)

    slab = jnp.zeros((_SLAB_ROWS, _SLAB_COLS), jnp.float32)
    slab = slab.at[_OFF_VEC:_OFF_VEC + 9, :].set(vec)
    slab = slab.at[_OFF_WV:_OFF_WV + E, :E].set(wv)
    slab = slab.at[_OFF_W1:_OFF_W1 + E, :].set(params["w1"])
    slab = slab.at[_OFF_W2:_OFF_W2 + MLP_RATIO * E, :E].set(params["w2"])
    return slab


# ---------------------------------------------------------------- wrapper ----
def decoder_block(x, encoder_embed, const_slab):
    b, n, E = x.shape

    x_flat = x.reshape(b * n, E)                              # flatten batch+seq (free)
    b_pad = ((b + 7) // 8) * 8                                # tile-aligned rows for the matmul
    enc_p = jnp.pad(encoder_embed, ((0, b_pad - b), (0, 0)))

    kernel = functools.partial(decoder_block_kernel, b=b, n=n)

    out_flat = pl.pallas_call(
        kernel,
        out_shape=jax.ShapeDtypeStruct((b * n, E), jnp.float32),
        grid=(1,),                                            # whole problem fits one VMEM tile
        in_specs=[
            pl.BlockSpec((b * n, E), lambda i: (0, 0)),               # x_flat
            pl.BlockSpec((b_pad, E), lambda i: (0, 0)),               # encoder rows (padded)
            pl.BlockSpec((_SLAB_ROWS, _SLAB_COLS), lambda i: (0, 0)),  # packed constants
        ],
        out_specs=pl.BlockSpec((b * n, E), lambda i: (0, 0)),
        compiler_params=pltpu.CompilerParams(
            # Single-step grid: no megacore split.  At production sizes use a
            # row-tiled grid (TM>=512) with dimension_semantics=("parallel",) and
            # budget VMEM for v7x (64 MiB) vs v5e/v6e (128 MiB).
            dimension_semantics=("arbitrary",)),
    )(x_flat, enc_p, const_slab)
    return out_flat.reshape(b, n, E)


# ------------------------------------------------------ parameters & ref ----
def init_params(key):
    """Full parameter set of the PyTorch module (right-multiply layout).  The dead
    self-attention weights and the dead q / K-path weights are generated for fidelity
    but never read by the kernel."""
    E = EMBED_DIM
    ks = jax.random.split(key, 10)

    def w(k, shape, s=0.1):
        return s * jax.random.normal(k, shape, jnp.float32)

    return {
        "w_qkv_sa": w(ks[0], (E, 3 * E)),            # SelfAttention.qkv   (dead in forward)
        "w_proj_sa": w(ks[1], (E, E)),               # SelfAttention.proj  (dead in forward)
        "ln1g": jnp.ones((1, E), jnp.float32),
        "ln1b": jnp.zeros((1, E), jnp.float32),
        "w_q": w(ks[2], (E, E)),                     # DecoderBlock.q (irrelevant: softmax uniform)
        "w_kv": w(ks[3], (E, 2 * E)),                # DecoderBlock.kv (with bias)
        "b_kv": w(ks[4], (1, 2 * E), 0.05),
        "w_proj_ca": w(ks[5], (E, E)),               # Attention.linear_proj (no bias)
        "ln2g": jnp.ones((1, E), jnp.float32),
        "ln2b": jnp.zeros((1, E), jnp.float32),
        "w1": w(ks[6], (E, MLP_RATIO * E)),
        "b1": w(ks[7], (1, MLP_RATIO * E), 0.05),
        "w2": w(ks[8], (MLP_RATIO * E, E)),
        "b2": w(ks[9], (1, E), 0.05),
        "ln3g": jnp.ones((1, E), jnp.float32),
        "ln3b": jnp.zeros((1, E), jnp.float32),
    }


def ref_forward(x, enc, p):
    """Pure-JAX reference of the effective forward (eval mode), computing the FULL
    cross-attention (q, k, softmax, heads) so it validates the kernel's closed-form
    collapse rather than sharing its shortcut."""
    b, n, E = x.shape
    H = N_HEADS
    d = E // H
    scale = float(H) ** -0.5                                  # reference uses n_heads**-0.5

    def ln(t, g, bt):
        mu = t.mean(-1, keepdims=True)
        var = ((t - mu) ** 2).mean(-1, keepdims=True)
        return (t - mu) / jnp.sqrt(var + LN_EPS) * g.reshape(-1) + bt.reshape(-1)

    h1 = ln(x + x, p["ln1g"], p["ln1b"])                      # self-attn output discarded in ref
    q = h1 @ p["w_q"]
    kv = enc @ p["w_kv"] + p["b_kv"].reshape(-1)              # (b, 2E)
    k = jnp.broadcast_to(kv[:, None, :E], (b, n, E))
    v = jnp.broadcast_to(kv[:, None, E:], (b, n, E))
    qh = q.reshape(b, n, H, d).transpose(0, 2, 1, 3)
    kh = k.reshape(b, n, H, d).transpose(0, 2, 1, 3)
    vh = v.reshape(b, n, H, d).transpose(0, 2, 1, 3)
    att = jax.nn.softmax(jnp.einsum("bhqd,bhkd->bhqk", qh, kh) * scale, axis=-1)
    ca = jnp.einsum("bhqk,bhkd->bhqd", att, vh).transpose(0, 2, 1, 3).reshape(b, n, E)
    ca = ca @ p["w_proj_ca"]
    h2 = ln(h1 + ca, p["ln2g"], p["ln2b"])
    hm = _gelu_exact(h2 @ p["w1"] + p["b1"].reshape(-1))
    mm = _gelu_exact(hm @ p["w2"] + p["b2"].reshape(-1))
    return ln(h2 + mm, p["ln3g"], p["ln3b"])


# ------------------------------------------------------------------- main ----
if __name__ == "__main__":
    key = jax.random.PRNGKey(0)
    k_x, k_e, k_p = jax.random.split(key, 3)

    b, n, E = 2, 8, EMBED_DIM
    x = jax.random.normal(k_x, (b, n, E), jnp.float32)            # decoder tokens
    encoder_embed = jax.random.normal(k_e, (b, E), jnp.float32)   # one encoder embedding / batch
    params = init_params(k_p)

    # One-time host-side fold/pack (outside the per-call path), jitted forward.
    const_slab = jax.block_until_ready(prepare_params(params))
    fwd = jax.jit(decoder_block)

    out = jax.block_until_ready(fwd(x, encoder_embed, const_slab))

    ref = ref_forward(x, encoder_embed, params)
    assert out.shape == (b, n, E)
    assert jnp.allclose(out, ref, atol=1e-4, rtol=1e-4), float(jnp.max(jnp.abs(out - ref)))

    print("KERNEL_OK")
</pallas_src>

<mosaic_0001>
module attributes {stable_mosaic.version = 11 : i64} {
  func.func @decoder_block_kernel(%arg0: i32, %arg1: memref<16x16xf32, #tpu.memory_space<vmem>>, %arg2: memref<8x16xf32, #tpu.memory_space<vmem>>, %arg3: memref<112x64xf32, #tpu.memory_space<vmem>>, %arg4: memref<16x16xf32, #tpu.memory_space<vmem>>) attributes {dimension_semantics = [#tpu.dimension_semantics<arbitrary>], iteration_bounds = array<i64: 1>, scalar_prefetch = 0 : i64, scratch_operands = 0 : i64, tpu.core_type = #tpu.core_type<tc>, window_params = [{pipeline_mode = #tpu.pipeline_mode<synchronous>, transform_indices = @transform_0, window_bounds = array<i64: 16, 16>}, {pipeline_mode = #tpu.pipeline_mode<synchronous>, transform_indices = @transform_1, window_bounds = array<i64: 8, 16>}, {pipeline_mode = #tpu.pipeline_mode<synchronous>, transform_indices = @transform_2, window_bounds = array<i64: 112, 64>}, {pipeline_mode = #tpu.pipeline_mode<synchronous>, transform_indices = @transform_3, window_bounds = array<i64: 16, 16>}]} {
    %c0 = arith.constant 0 : index
    %c0_0 = arith.constant 0 : index
    %0 = vector.load %arg1[%c0, %c0_0] : memref<16x16xf32, #tpu.memory_space<vmem>>, vector<16x16xf32>
    %c0_1 = arith.constant 0 : index
    %c0_2 = arith.constant 0 : index
    %1 = vector.load %arg2[%c0_1, %c0_2] : memref<8x16xf32, #tpu.memory_space<vmem>>, vector<8x16xf32>
    %c0_3 = arith.constant 0 : index
    %c0_4 = arith.constant 0 : index
    %2 = vector.load %arg3[%c0_3, %c0_4] : memref<112x64xf32, #tpu.memory_space<vmem>>, vector<9x64xf32>
    %3 = vector.extract_strided_slice %2 {offsets = [0, 0], sizes = [1, 16], strides = [1, 1]} : vector<9x64xf32> to vector<1x16xf32>
    %4 = vector.extract_strided_slice %2 {offsets = [1, 0], sizes = [1, 16], strides = [1, 1]} : vector<9x64xf32> to vector<1x16xf32>
    %5 = vector.extract_strided_slice %2 {offsets = [2, 0], sizes = [1, 16], strides = [1, 1]} : vector<9x64xf32> to vector<1x16xf32>
    %6 = vector.extract_strided_slice %2 {offsets = [3, 0], sizes = [1, 16], strides = [1, 1]} : vector<9x64xf32> to vector<1x16xf32>
    %7 = vector.extract_strided_slice %2 {offsets = [4, 0], sizes = [1, 16], strides = [1, 1]} : vector<9x64xf32> to vector<1x16xf32>
    %8 = vector.extract_strided_slice %2 {offsets = [5, 0], sizes = [1, 16], strides = [1, 1]} : vector<9x64xf32> to vector<1x16xf32>
    %9 = vector.extract_strided_slice %2 {offsets = [6, 0], sizes = [1, 16], strides = [1, 1]} : vector<9x64xf32> to vector<1x16xf32>
    %10 = vector.extract_strided_slice %2 {offsets = [7, 0], sizes = [1, 64], strides = [1, 1]} : vector<9x64xf32> to vector<1x64xf32>
    %11 = vector.extract_strided_slice %2 {offsets = [8, 0], sizes = [1, 16], strides = [1, 1]} : vector<9x64xf32> to vector<1x16xf32>
    %c16 = arith.constant 16 : index
    %c0_5 = arith.constant 0 : index
    %12 = vector.load %arg3[%c16, %c0_5] : memref<112x64xf32, #tpu.memory_space<vmem>>, vector<16x16xf32>
    %c32 = arith.constant 32 : index
    %c0_6 = arith.constant 0 : index
    %13 = vector.load %arg3[%c32, %c0_6] : memref<112x64xf32, #tpu.memory_space<vmem>>, vector<16x64xf32>
    %c48 = arith.constant 48 : index
    %c0_7 = arith.constant 0 : index
    %14 = vector.load %arg3[%c48, %c0_7] : memref<112x64xf32, #tpu.memory_space<vmem>>, vector<64x16xf32>
    %cst = arith.constant 2.000000e+00 : f32
    %15 = vector.broadcast %cst : f32 to vector<16x16xf32>
    %16 = arith.mulf %15, %0 : vector<16x16xf32>
    %cst_8 = arith.constant dense<0.000000e+00> : vector<16xf32>
    %17 = vector.multi_reduction <add>, %16, %cst_8 [1] : vector<16x16xf32> to vector<16xf32>
    %18 = vector.shape_cast %17 : vector<16xf32> to vector<16x1xf32>
    %cst_9 = arith.constant 1.600000e+01 : f32
    %19 = vector.broadcast %cst_9 : f32 to vector<16x1xf32>
    %20 = arith.divf %18, %19 : vector<16x1xf32>
    %21 = vector.broadcast %20 : vector<16x1xf32> to vector<16x16xf32>
    %22 = arith.subf %16, %21 : vector<16x16xf32>
    %23 = arith.mulf %22, %22 : vector<16x16xf32>
    %cst_10 = arith.constant dense<0.000000e+00> : vector<16xf32>
    %24 = vector.multi_reduction <add>, %23, %cst_10 [1] : vector<16x16xf32> to vector<16xf32>
    %25 = vector.shape_cast %24 : vector<16xf32> to vector<16x1xf32>
    %cst_11 = arith.constant 1.600000e+01 : f32
    %26 = vector.broadcast %cst_11 : f32 to vector<16x1xf32>
    %27 = arith.divf %25, %26 : vector<16x1xf32>
    %28 = vector.broadcast %20 : vector<16x1xf32> to vector<16x16xf32>
    %29 = arith.subf %16, %28 : vector<16x16xf32>
    %cst_12 = arith.constant 9.99999974E-6 : f32
    %30 = vector.broadcast %cst_12 : f32 to vector<16x1xf32>
    %31 = arith.addf %27, %30 : vector<16x1xf32>
    %32 = math.rsqrt %31 : vector<16x1xf32>
    %33 = vector.broadcast %32 : vector<16x1xf32> to vector<16x16xf32>
    %34 = arith.mulf %29, %33 : vector<16x16xf32>
    %35 = vector.broadcast %3 : vector<1x16xf32> to vector<16x16xf32>
    %36 = arith.mulf %34, %35 : vector<16x16xf32>
    %37 = vector.broadcast %4 : vector<1x16xf32> to vector<16x16xf32>
    %38 = arith.addf %36, %37 : vector<16x16xf32>
    %cst_13 = arith.constant dense<0.000000e+00> : vector<8x16xf32>
    %39 = tpu.matmul %1, %12, %cst_13 {dimension_numbers = #tpu.dot_dimension_numbers<[1], [0], [0], [1], [0, 0, 1, 1], [], []>} : vector<8x16xf32>, vector<16x16xf32>, vector<8x16xf32> -> vector<8x16xf32>
    %40 = vector.broadcast %9 : vector<1x16xf32> to vector<8x16xf32>
    %41 = arith.addf %39, %40 : vector<8x16xf32>
    %42 = vector.extract_strided_slice %38 {offsets = [0, 0], sizes = [8, 16], strides = [1, 1]} : vector<16x16xf32> to vector<8x16xf32>
    %43 = vector.extract_strided_slice %41 {offsets = [0, 0], sizes = [1, 16], strides = [1, 1]} : vector<8x16xf32> to vector<1x16xf32>
    %44 = vector.broadcast %43 : vector<1x16xf32> to vector<8x16xf32>
    %45 = arith.addf %42, %44 : vector<8x16xf32>
    %46 = vector.extract_strided_slice %38 {offsets = [8, 0], sizes = [8, 16], strides = [1, 1]} : vector<16x16xf32> to vector<8x16xf32>
    %47 = vector.extract_strided_slice %41 {offsets = [1, 0], sizes = [1, 16], strides = [1, 1]} : vector<8x16xf32> to vector<1x16xf32>
    %48 = vector.broadcast %47 : vector<1x16xf32> to vector<8x16xf32>
    %49 = arith.addf %46, %48 : vector<8x16xf32>
    %50 = tpu.concatenate %45, %49 in 0 : vector<8x16xf32>, vector<8x16xf32> -> vector<16x16xf32>
    %cst_14 = arith.constant dense<0.000000e+00> : vector<16xf32>
    %51 = vector.multi_reduction <add>, %50, %cst_14 [1] : vector<16x16xf32> to vector<16xf32>
    %52 = vector.shape_cast %51 : vector<16xf32> to vector<16x1xf32>
    %cst_15 = arith.constant 1.600000e+01 : f32
    %53 = vector.broadcast %cst_15 : f32 to vector<16x1xf32>
    %54 = arith.divf %52, %53 : vector<16x1xf32>
    %55 = vector.broadcast %54 : vector<16x1xf32> to vector<16x16xf32>
    %56 = arith.subf %50, %55 : vector<16x16xf32>
    %57 = arith.mulf %56, %56 : vector<16x16xf32>
    %cst_16 = arith.constant dense<0.000000e+00> : vector<16xf32>
    %58 = vector.multi_reduction <add>, %57, %cst_16 [1] : vector<16x16xf32> to vector<16xf32>
    %59 = vector.shape_cast %58 : vector<16xf32> to vector<16x1xf32>
    %cst_17 = arith.constant 1.600000e+01 : f32
    %60 = vector.broadcast %cst_17 : f32 to vector<16x1xf32>
    %61 = arith.divf %59, %60 : vector<16x1xf32>
    %62 = vector.broadcast %54 : vector<16x1xf32> to vector<16x16xf32>
    %63 = arith.subf %50, %62 : vector<16x16xf32>
    %cst_18 = arith.constant 9.99999974E-6 : f32
    %64 = vector.broadcast %cst_18 : f32 to vector<16x1xf32>
    %65 = arith.addf %61, %64 : vector<16x1xf32>
    %66 = math.rsqrt %65 : vector<16x1xf32>
    %67 = vector.broadcast %66 : vector<16x1xf32> to vector<16x16xf32>
    %68 = arith.mulf %63, %67 : vector<16x16xf32>
    %69 = vector.broadcast %5 : vector<1x16xf32> to vector<16x16xf32>
    %70 = arith.mulf %68, %69 : vector<16x16xf32>
    %71 = vector.broadcast %6 : vector<1x16xf32> to vector<16x16xf32>
    %72 = arith.addf %70, %71 : vector<16x16xf32>
    %cst_19 = arith.constant dense<0.000000e+00> : vector<16x64xf32>
    %73 = tpu.matmul %72, %13, %cst_19 {dimension_numbers = #tpu.dot_dimension_numbers<[1], [0], [0], [1], [0, 0, 1, 1], [], []>} : vector<16x16xf32>, vector<16x64xf32>, vector<16x64xf32> -> vector<16x64xf32>
    %74 = vector.broadcast %10 : vector<1x64xf32> to vector<16x64xf32>
    %75 = arith.addf %73, %74 : vector<16x64xf32>
    %cst_20 = arith.constant 5.000000e-01 : f32
    %76 = vector.broadcast %cst_20 : f32 to vector<16x64xf32>
    %77 = arith.mulf %76, %75 : vector<16x64xf32>
    %cst_21 = arith.constant 0.707106769 : f32
    %78 = vector.broadcast %cst_21 : f32 to vector<16x64xf32>
    %79 = arith.mulf %75, %78 : vector<16x64xf32>
    %80 = math.erf %79 : vector<16x64xf32>
    %cst_22 = arith.constant 1.000000e+00 : f32
    %81 = vector.broadcast %cst_22 : f32 to vector<16x64xf32>
    %82 = arith.addf %81, %80 : vector<16x64xf32>
    %83 = arith.mulf %77, %82 : vector<16x64xf32>
    %cst_23 = arith.constant dense<0.000000e+00> : vector<16x16xf32>
    %84 = tpu.matmul %83, %14, %cst_23 {dimension_numbers = #tpu.dot_dimension_numbers<[1], [0], [0], [1], [0, 0, 1, 1], [], []>} : vector<16x64xf32>, vector<64x16xf32>, vector<16x16xf32> -> vector<16x16xf32>
    %85 = vector.broadcast %11 : vector<1x16xf32> to vector<16x16xf32>
    %86 = arith.addf %84, %85 : vector<16x16xf32>
    %cst_24 = arith.constant 5.000000e-01 : f32
    %87 = vector.broadcast %cst_24 : f32 to vector<16x16xf32>
    %88 = arith.mulf %87, %86 : vector<16x16xf32>
    %cst_25 = arith.constant 0.707106769 : f32
    %89 = vector.broadcast %cst_25 : f32 to vector<16x16xf32>
    %90 = arith.mulf %86, %89 : vector<16x16xf32>
    %91 = math.erf %90 : vector<16x16xf32>
    %cst_26 = arith.constant 1.000000e+00 : f32
    %92 = vector.broadcast %cst_26 : f32 to vector<16x16xf32>
    %93 = arith.addf %92, %91 : vector<16x16xf32>
    %94 = arith.mulf %88, %93 : vector<16x16xf32>
    %95 = arith.addf %72, %94 : vector<16x16xf32>
    %cst_27 = arith.constant dense<0.000000e+00> : vector<16xf32>
    %96 = vector.multi_reduction <add>, %95, %cst_27 [1] : vector<16x16xf32> to vector<16xf32>
    %97 = vector.shape_cast %96 : vector<16xf32> to vector<16x1xf32>
    %cst_28 = arith.constant 1.600000e+01 : f32
    %98 = vector.broadcast %cst_28 : f32 to vector<16x1xf32>
    %99 = arith.divf %97, %98 : vector<16x1xf32>
    %100 = vector.broadcast %99 : vector<16x1xf32> to vector<16x16xf32>
    %101 = arith.subf %95, %100 : vector<16x16xf32>
    %102 = arith.mulf %101, %101 : vector<16x16xf32>
    %cst_29 = arith.constant dense<0.000000e+00> : vector<16xf32>
    %103 = vector.multi_reduction <add>, %102, %cst_29 [1] : vector<16x16xf32> to vector<16xf32>
    %104 = vector.shape_cast %103 : vector<16xf32> to vector<16x1xf32>
    %cst_30 = arith.constant 1.600000e+01 : f32
    %105 = vector.broadcast %cst_30 : f32 to vector<16x1xf32>
    %106 = arith.divf %104, %105 : vector<16x1xf32>
    %107 = vector.broadcast %99 : vector<16x1xf32> to vector<16x16xf32>
    %108 = arith.subf %95, %107 : vector<16x16xf32>
    %cst_31 = arith.constant 9.99999974E-6 : f32
    %109 = vector.broadcast %cst_31 : f32 to vector<16x1xf32>
    %110 = arith.addf %106, %109 : vector<16x1xf32>
    %111 = math.rsqrt %110 : vector<16x1xf32>
    %112 = vector.broadcast %111 : vector<16x1xf32> to vector<16x16xf32>
    %113 = arith.mulf %108, %112 : vector<16x16xf32>
    %114 = vector.broadcast %7 : vector<1x16xf32> to vector<16x16xf32>
    %115 = arith.mulf %113, %114 : vector<16x16xf32>
    %116 = vector.broadcast %8 : vector<1x16xf32> to vector<16x16xf32>
    %117 = arith.addf %115, %116 : vector<16x16xf32>
    %c0_32 = arith.constant 0 : index
    %c0_33 = arith.constant 0 : index
    %118 = vector.load %arg4[%c0_32, %c0_33] : memref<16x16xf32, #tpu.memory_space<vmem>>, vector<16x16xf32>
    tpu.vector_store %arg4[%c0_32, %c0_33], %117 {strides = array<i32>} : memref<16x16xf32, #tpu.memory_space<vmem>>, vector<16x16xf32>,
    return
  }
  func.func @transform_0(%arg0: i32) -> (i32, i32) {
    %c0_i32 = arith.constant 0 : i32
    %c0_i32_0 = arith.constant 0 : i32
    %c0_i32_1 = arith.constant 0 : i32
    return %c0_i32, %c0_i32_0 : i32, i32
  }
  func.func @transform_1(%arg0: i32) -> (i32, i32) {
    %c0_i32 = arith.constant 0 : i32
    %c0_i32_0 = arith.constant 0 : i32
    %c0_i32_1 = arith.constant 0 : i32
    return %c0_i32, %c0_i32_0 : i32, i32
  }
  func.func @transform_2(%arg0: i32) -> (i32, i32) {
    %c0_i32 = arith.constant 0 : i32
    %c0_i32_0 = arith.constant 0 : i32
    %c0_i32_1 = arith.constant 0 : i32
    return %c0_i32, %c0_i32_0 : i32, i32
  }
  func.func @transform_3(%arg0: i32) -> (i32, i32) {
    %c0_i32 = arith.constant 0 : i32
    %c0_i32_0 = arith.constant 0 : i32
    %c0_i32_1 = arith.constant 0 : i32
    return %c0_i32, %c0_i32_0 : i32, i32
  }
}

</mosaic_0001>

<bundles_post_ra>
// kernel: decoder_block.1
= control target key start
LH: loop header
LB: loop body
LE: loop exit
PB: predicated region body
PF: predicated region fallthrough
CT: control target
= control target key end

     0   :  { %vm34_vm0 = vcmask 130048   ;;  %v551_v5 = vmov 0.0   ;;  %vm552_vm1 = vmmov 0   ;;  %s675_s0 = inlined_call_operand.vmem [shape: f32[16,16], index: 0, kind: input, shape index: {}]   ;;  %s676_s1 = inlined_call_operand.vmem [shape: f32[8,16], index: 1, kind: input, shape index: {}]   ;;  %s677_s2 = inlined_call_operand.vmem [shape: f32[112,64], index: 2, kind: input, shape index: {}]   ;;  %s678_s3 = inlined_call_operand.hbm [shape: f32[16,16], index: 3, kind: output, shape index: {}]  }
   0x1   :  { %v15_v0 = vld [vmem:[%s675_s0] sm:$0xff]  ;;  %v16_v1 = vld [vmem:[%s675_s0 + $0x8] sm:$0xff]  ;;  %v21_v2 = vld [vmem:[%s677_s2 + $0x18] sm:$0xff]  ;;  %471 = vmatprep.subr.mxu1 %v551_v5  ;;  %475 = vmatprep.mubr.msk.f32.mxu1 %vm552_vm1, %v551_v5 }
   0x2   :  { %v32_v3 = vmul.f32 2.0, %v15_v0  ;;  %v33_v4 = vmul.f32 2.0, %v16_v1  ;;  %v20_v6 = vld [vmem:[%s677_s2 + $0x10] sm:$0xff] }
   0x3   :  { %8 = vsyncpa [#allocation3], 0  ;;  %472 = vmatpush3.msra.mxu1 %v21_v2  ;;  %v17_v7 = vld [vmem:[%s676_s1] sm:$0xff]  ;;  %v62_v24 = vlaneseq  ;;  %v23_v62 = vld [vmem:[%s677_s2 + $0x28] sm:$0xff]  ;;  %vm298_vm2 = vcmask 523264  }
   0x4   :  { %v35_v8 = vsel %vm34_vm0, %v32_v3, 0.0  ;;  %473 = vmatprep.subr.mxu1 %v551_v5  ;;  %v38_v9 = vsel %vm34_vm0, %v33_v4, 0.0  ;;  %v602_v31 = vld [vmem:[%s677_s2] sm:$0xff] }
   0x5   :  { %36 = vadd.xlane.f32.xlu0 %v35_v8  ;;  %474 = vmatpush3.msra.mxu1 %v20_v6  ;;  %v596_v28 = vshrl.u32 %v62_v24, 7  ;;  %v22_v63 = vld [vmem:[%s677_s2 + $0x20] sm:$0xff]  ;;  %v25_v24 = vld [vmem:[%s677_s2 + $0x38] sm:$0xff] }
   0x6   :  { %476 = vmatmul.mubr.msk.f32.vlgmr.msra.gmra.mxu1 %vm34_vm0, %v17_v7  ;;  %478 = vmatprep.subr.mxu1 %v23_v62 }
   0x7   :  { %v76_v30 = vsub.s32 6, %v596_v28  ;;  %v64_v32 = vsub.s32 0, %v596_v28  ;;  %v70_v34 = vsub.s32 1, %v596_v28  ;;  %479 = vmatpush3.msra.mxu1 %v23_v62  ;;  %v189_v6 = vsub.s32 2, %v596_v28 }
   0x8   :  { %480 = vmatprep.subr.mxu1 %v22_v63  ;;  %v195_v7 = vsub.s32 3, %v596_v28 }
   0x9   :  { %39 = vadd.xlane.f32.xlu0 %v38_v9  ;;  %v77_v33 = vrot.slane %v602_v31, %v76_v30  ;;  %v65_v35 = vrot.slane %v602_v31, %v64_v32  ;;  %v71_v39 = vrot.slane %v602_v31, %v70_v34  ;;  %481 = vmatpush3.msra.mxu1 %v22_v63 }
   0xa   :  { %v190_v8 = vrot.slane %v602_v31, %v189_v6 }
  0x8e   :  { %v37_v10 = vpop.xlane.xlu0 %36 }
  0x8f   :  { %v42_v11 = vmul.f32 0.0625, %v37_v10 }
  0x91   :  { %v44_v12 = vsub.f32 %v32_v3, %v42_v11  ;;  %v196_v11 = vrot.slane %v602_v31, %v195_v7 }
  0x92   :  { %v40_v13 = vpop.xlane.xlu0 %39 }
  0x93   :  { %v43_v14 = vmul.f32 0.0625, %v40_v13  ;;  %v46_v15 = vmul.f32 %v44_v12, %v44_v12 }
  0x95   :  { %v45_v16 = vsub.f32 %v33_v4, %v43_v14  ;;  %v48_v17 = vsel %vm34_vm0, %v46_v15, 0.0 }
  0x96   :  { %49 = vadd.xlane.f32.xlu1 %v48_v17 }
  0x97   :  { %v47_v18 = vmul.f32 %v45_v16, %v45_v16 }
  0x99   :  { %v51_v19 = vsel %vm34_vm0, %v47_v18, 0.0  ;;  %v31_v18 = vld [vmem:[%s677_s2 + $0x68] sm:$0xff] }
  0x9a   :  { %52 = vadd.xlane.f32.xlu1 %v51_v19  ;;  %485 = vmatprep.subr.mxu0 %v31_v18  ;;  %v30_v19 = vld [vmem:[%s677_s2 + $0x60] sm:$0xff] }
  0x9b   :  { %486 = vmatpush3.msra.mxu0 %v31_v18 }
  0x9c   :  { %487 = vmatprep.subr.mxu0 %v30_v19 }
  0x9d   :  { %488 = vmatpush3.msra.mxu0 %v30_v19 }
  0xc6   :  { %v147_v20 = vpop.f32.mrf.mxu1 }
  0xc7   :  { %v148_v36 = vadd.f32 %v147_v20, %v77_v33  ;;  %v29_v20 = vld [vmem:[%s677_s2 + $0x58] sm:$0xff] }
  0xc8   :  { %v477_v21 = vpop.f32.mrf.mxu1  ;;  %489 = vmatprep.subr.mxu0 %v29_v20 }
  0xc9   :  { %v154_v40 = vrot.slane %v148_v36, %v64_v32  ;;  %v159_v45 = vrot.slane %v148_v36, %v70_v34  ;;  %490 = vmatpush3.msra.mxu0 %v29_v20  ;;  %v28_v21 = vld [vmem:[%s677_s2 + $0x50] sm:$0xff] }
  0xca   :  { %491 = vmatprep.subr.mxu0 %v28_v21 }
  0xcb   :  { %492 = vmatpush3.msra.mxu0 %v28_v21 }
 0x11f   :  { %v50_v22 = vpop.xlane.xlu1 %49 }
 0x120   :  { %v54_v23 = vmul.f32 0.0625, %v50_v22  ;;  %v27_v22 = vld [vmem:[%s677_s2 + $0x48] sm:$0xff] }
 0x121   :  { %493 = vmatprep.subr.mxu0 %v27_v22 }
 0x122   :  { %v56_v25 = vadd.f32 1e-05, %v54_v23  ;;  %494 = vmatpush3.msra.mxu0 %v27_v22  ;;  %v26_v23 = vld [vmem:[%s677_s2 + $0x40] sm:$0xff] }
 0x123   :  { %v53_v26 = vpop.xlane.xlu1 %52  ;;  %495 = vmatprep.subr.mxu0 %v26_v23 }
 0x124   :  { %509 = vrsqrt.f32 %v56_v25  ;;  %v55_v27 = vmul.f32 0.0625, %v53_v26  ;;  %496 = vmatpush3.msra.mxu0 %v26_v23  ;;  %v24_v25 = vld [vmem:[%s677_s2 + $0x30] sm:$0xff]  ;;  %v201_v26 = vsub.s32 7, %v596_v28 }
 0x125   :  { %497 = vmatprep.subr.mxu0 %v25_v24 }
 0x126   :  { %v57_v29 = vadd.f32 1e-05, %v55_v27  ;;  %498 = vmatpush3.msra.mxu0 %v25_v24  ;;  %v202_v27 = vrot.slane %v602_v31, %v201_v26 }
 0x127   :  { %499 = vmatprep.subr.mxu0 %v24_v25 }
 0x128   :  { %511 = vrsqrt.f32 %v57_v29  ;;  %500 = vmatpush3.msra.mxu0 %v24_v25 }
 0x131   :  { %v510_v37 = vpop.eup %509 }
 0x132   :  { %v60_v38 = vmul.f32 %v510_v37, %v44_v12 }
 0x134   :  { %v66_v41 = vmul.f32 %v65_v35, %v60_v38 }
 0x135   :  { %v512_v42 = vpop.eup %511 }
 0x136   :  { %v72_v43 = vadd.f32 %v71_v39, %v66_v41  ;;  %v61_v44 = vmul.f32 %v512_v42, %v45_v16 }
 0x138   :  { %v155_v46 = vadd.f32 %v154_v40, %v72_v43  ;;  %v67_v47 = vmul.f32 %v65_v35, %v61_v44  ;;  %v451_v44 = vld [vmem:[%s677_s2 + $0x8] ss:$0 sm:$0xff]  ;;  %s553_s2 = smov [#allocation2]  }
 0x139   :  { %s437_s17 = sshll.u32 %s553_s2, 4  ;;  %s438_s17 = int_to_ptr.vmem [resolvable:$true] %s437_s17 }
 0x13a   :  { %v161_v48 = vsel %vm34_vm0, %v155_v46, 0.0  ;;  %v73_v49 = vadd.f32 %v71_v39, %v67_v47  ;;  %s529_s18 = scalar_lea.vmem %s438_s17, 256  ;;  %p534_p1 = scmp.lt.s32.totalorder %s438_s17, %s438_s17 }
 0x13b   :  { %162 = vadd.xlane.f32.xlu0 %v161_v48  ;;  %p530_p0 = scmp.ne.s32.totalorder %s438_s17, %s529_s18  ;;  %p535_p2 = scmp.lt.s32.totalorder %s529_s18, %s529_s18 }
 0x13c   :  { %v160_v50 = vadd.f32 %v159_v45, %v73_v49 }
 0x13d   :  { %p536_p3 = por %p535_p2, %p534_p1 }
 0x13e   :  { %v164_v51 = vsel %vm34_vm0, %v160_v50, 0.0 }
 0x13f   :  { %165 = vadd.xlane.f32.xlu1 %v164_v51  ;;  %p537_p4 = pnand %p536_p3, %p530_p0 }
 0x1c4   :  { %v163_v52 = vpop.xlane.xlu0 %162 }
 0x1c5   :  { %v167_v53 = vmul.f32 0.0625, %v163_v52 }
 0x1c7   :  { %v169_v54 = vsub.f32 %v155_v46, %v167_v53 }
 0x1c8   :  { %v166_v55 = vpop.xlane.xlu1 %165 }
 0x1c9   :  { %v168_v56 = vmul.f32 0.0625, %v166_v55  ;;  %v171_v57 = vmul.f32 %v169_v54, %v169_v54 }
 0x1cb   :  { %v170_v58 = vsub.f32 %v160_v50, %v168_v56  ;;  %v173_v59 = vsel %vm34_vm0, %v171_v57, 0.0 }
 0x1cc   :  { %174 = vadd.xlane.f32.xlu0 %v173_v59 }
 0x1cd   :  { %v172_v60 = vmul.f32 %v170_v58, %v170_v58 }
 0x1cf   :  { %v176_v61 = vsel %vm34_vm0, %v172_v60, 0.0 }
 0x1d0   :  { %177 = vadd.xlane.f32.xlu1 %v176_v61 }
 0x255   :  { %v175_v0 = vpop.xlane.xlu0 %174 }
 0x256   :  { %v179_v1 = vmul.f32 0.0625, %v175_v0 }
 0x258   :  { %v181_v2 = vadd.f32 1e-05, %v179_v1 }
 0x259   :  { %v178_v3 = vpop.xlane.xlu1 %177 }
 0x25a   :  { %513 = vrsqrt.f32 %v181_v2  ;;  %v180_v4 = vmul.f32 0.0625, %v178_v3 }
 0x25c   :  { %v182_v5 = vadd.f32 1e-05, %v180_v4 }
 0x25e   :  { %515 = vrsqrt.f32 %v182_v5 }
 0x267   :  { %v514_v9 = vpop.eup %513 }
 0x268   :  { %v185_v10 = vmul.f32 %v514_v9, %v169_v54 }
 0x26a   :  { %v191_v12 = vmul.f32 %v190_v8, %v185_v10 }
 0x26b   :  { %v516_v13 = vpop.eup %515 }
 0x26c   :  { %v186_v14 = vmul.f32 %v516_v13, %v170_v58  ;;  %v623_v15 = vadd.f32 %v196_v11, %v191_v12 }
 0x26e   :  { %v192_v16 = vmul.f32 %v190_v8, %v186_v14  ;;  %482 = vmatprep.mubr.msk.f32.mxu1 %vm34_vm0, %v623_v15 }
 0x270   :  { %v627_v17 = vadd.f32 %v196_v11, %v192_v16  ;;  %v426_v16 = vsub.s32 5, %v596_v28 }
 0x272   :  { %483 = vmatmul.mubr.msk.f32.vlgmr.msra.gmra.mxu1 %vm34_vm0, %v627_v17  ;;  %v427_v20 = vrot.slane %v602_v31, %v426_v16 }
 0x332   :  { %v484_v29 = vpop.f32.mrf.mxu1 }
 0x333   :  { %v281_v30 = vadd.f32 %v484_v29, %v202_v27 }
 0x334   :  { %v275_v32 = vpop.f32.mrf.mxu1 }
 0x335   :  { %v287_v33 = vmul.f32 0.70710677, %v281_v30  ;;  %v276_v34 = vadd.f32 %v275_v32, %v202_v27  ;;  %v285_v41 = vmul.f32 0.5, %v281_v30 }
 0x337   :  { %517 = verf.f32 %v287_v33  ;;  %v286_v35 = vmul.f32 0.70710677, %v276_v34  ;;  %v284_v39 = vmul.f32 0.5, %v276_v34 }
 0x339   :  { %519 = verf.f32 %v286_v35 }
 0x344   :  { %v518_v36 = vpop.eup %517 }
 0x345   :  { %v291_v38 = vadd.f32 1.0, %v518_v36 }
 0x346   :  { %v520_v37 = vpop.eup %519 }
 0x347   :  { %v290_v40 = vadd.f32 1.0, %v520_v37  ;;  %v293_v43 = vmul.f32 %v291_v38, %v285_v41 }
 0x349   :  { %v292_v42 = vmul.f32 %v290_v40, %v284_v39 }
 0x34b   :  { %501 = vmatprep.mubr.msk.f32.mxu0 %vm298_vm2, %v292_v42 }
 0x34c   :  { %502 = vmatmul.mubr.msk.f32.vlgmr.msra.gmra.mxu0 %vm298_vm2, %v293_v43 }
 0x40c   :  { %v503_v45 = vpop.f32.mrf.mxu0 }
 0x40d   :  { %v377_v46 = vadd.f32 %v503_v45, %v451_v44 }
 0x40e   :  { %v371_v47 = vpop.f32.mrf.mxu0 }
 0x40f   :  { %v383_v48 = vmul.f32 0.70710677, %v377_v46  ;;  %v372_v49 = vadd.f32 %v451_v44, %v371_v47  ;;  %v381_v52 = vmul.f32 0.5, %v377_v46 }
 0x411   :  { %521 = verf.f32 %v383_v48  ;;  %v382_v50 = vmul.f32 0.70710677, %v372_v49  ;;  %v380_v55 = vmul.f32 0.5, %v372_v49 }
 0x413   :  { %523 = verf.f32 %v382_v50 }
 0x41e   :  { %v522_v51 = vpop.eup %521 }
 0x41f   :  { %v387_v53 = vadd.f32 1.0, %v522_v51 }
 0x420   :  { %v524_v54 = vpop.eup %523 }
 0x421   :  { %v389_v56 = vmul.f32 %v387_v53, %v381_v52  ;;  %v386_v57 = vadd.f32 1.0, %v524_v54 }
 0x423   :  { %v391_v58 = vadd.f32 %v389_v56, %v627_v17  ;;  %v388_v59 = vmul.f32 %v386_v57, %v380_v55 }
 0x425   :  { %v395_v60 = vsel %vm34_vm0, %v391_v58, 0.0  ;;  %v390_v61 = vadd.f32 %v388_v59, %v623_v15  ;;  %v420_v15 = vsub.s32 4, %v596_v28 }
 0x426   :  { %396 = vadd.xlane.f32.xlu1 %v395_v60 }
 0x427   :  { %v392_v62 = vsel %vm34_vm0, %v390_v61, 0.0  ;;  %v421_v17 = vrot.slane %v602_v31, %v420_v15 }
 0x428   :  { %393 = vadd.xlane.f32.xlu0 %v392_v62 }
 0x4af   :  { %v397_v63 = vpop.xlane.xlu1 %396 }
 0x4b0   :  { %v399_v0 = vmul.f32 0.0625, %v397_v63 }
 0x4b1   :  { %v394_v1 = vpop.xlane.xlu0 %393 }
 0x4b2   :  { %v401_v2 = vsub.f32 %v391_v58, %v399_v0  ;;  %v398_v3 = vmul.f32 0.0625, %v394_v1 }
 0x4b4   :  { %v400_v4 = vsub.f32 %v390_v61, %v398_v3  ;;  %v403_v5 = vmul.f32 %v401_v2, %v401_v2 }
 0x4b6   :  { %v407_v6 = vsel %vm34_vm0, %v403_v5, 0.0  ;;  %v402_v7 = vmul.f32 %v400_v4, %v400_v4 }
 0x4b7   :  { %408 = vadd.xlane.f32.xlu1 %v407_v6 }
 0x4b8   :  { %v404_v8 = vsel %vm34_vm0, %v402_v7, 0.0 }
 0x4b9   :  { %405 = vadd.xlane.f32.xlu0 %v404_v8 }
 0x540   :  { %v409_v9 = vpop.xlane.xlu1 %408 }
 0x541   :  { %v411_v10 = vmul.f32 0.0625, %v409_v9 }
 0x542   :  { %v406_v11 = vpop.xlane.xlu0 %405 }
 0x543   :  { %v413_v12 = vadd.f32 1e-05, %v411_v10  ;;  %v410_v13 = vmul.f32 0.0625, %v406_v11 }
 0x545   :  { %525 = vrsqrt.f32 %v413_v12  ;;  %v412_v14 = vadd.f32 1e-05, %v410_v13 }
 0x547   :  { %527 = vrsqrt.f32 %v412_v14 }
 0x552   :  { %v526_v18 = vpop.eup %525 }
 0x553   :  { %v417_v19 = vmul.f32 %v526_v18, %v401_v2 }
 0x554   :  { %v528_v21 = vpop.eup %527 }
 0x555   :  { %v416_v22 = vmul.f32 %v528_v21, %v400_v4  ;;  %v423_v23 = vmul.f32 %v421_v17, %v417_v19 }
 0x557   :  { %v422_v24 = vmul.f32 %v421_v17, %v416_v22  ;;  %v429_v25 = vadd.f32 %v427_v20, %v423_v23 }
 0x559   :  { %v428_v26 = vadd.f32 %v427_v20, %v422_v24  ;;  %431 = vst.msk [vmem:[#allocation2 + $0x8] sm:$0xff] %vm34_vm0, %v429_v25 }
 0x55b   :  { %430 = vst.msk [vmem:[#allocation2] sm:$0xff] %vm34_vm0, %v428_v26 }
 0x55c   :  { %540 = shalt.err (!%p537_p4)
}
 0x55d   :  { %s554_s19 = smov 128   ;;  %s555_s20 = smov 8  }
 0x55e   :  { %443 = dma.vmem_to_hbm [thread:$0]  %s438_s17, 256, %s678_s3, [#allocation3], %s554_s19, %s554_s19, %s555_s20  }
 0x55f   :  { %549 = dma.done.wait [#allocation3], 256  }
 0x560   :  { %550 = vsyncadd [#allocation3], 4294967040 }
 0x561   :  { %447 = vsyncpa [#allocation3], 1 }

</bundles_post_ra>
